<compile_context>
chip_gen: v5e
topology: v5e:2x2
jax: 0.10.0
libtpu: 0.0.40
codegen_flags: <defaults>
</compile_context>

<pallas_src>
import functools
import math

import jax
import jax.numpy as jnp
from jax.experimental import pallas as pl
from jax.experimental.pallas import tpu as pltpu

_LANES = 128


def _focal_loss_kernel(x_ref, t_ref, part_ref, *, gamma, tile_r, n,
                       needs_mask, binary_targets):
    p = x_ref[...].astype(jnp.float32)
    t = t_ref[...].astype(jnp.float32)

    if binary_targets:
        # t in {0,1}: BCE = -clamp(log(p_sel)), pt = p_sel (up to the clamp).
        p_sel = jnp.where(t >= 0.5, p, 1.0 - p)
        bce = -jnp.maximum(jnp.log(p_sel), -100.0)
        pt = jnp.maximum(p_sel, jnp.float32(math.exp(-100.0)))
    else:
        # General path: BCELoss(reduction='none') with PyTorch's -100 log clamp.
        log_p = jnp.maximum(jnp.log(p), -100.0)
        log_1mp = jnp.maximum(jnp.log(1.0 - p), -100.0)
        bce = -(t * log_p + (1.0 - t) * log_1mp)
        pt = jnp.exp(-bce)

    one_minus_pt = 1.0 - pt

    # (1 - pt) ** gamma: explicit multiplies for integer gamma (saves the
    # exp/log pair pow would cost); fall back to pow otherwise.
    g = float(gamma)
    if g.is_integer() and g >= 0:
        gi = int(g)
        if gi == 0:
            mod = jnp.ones_like(one_minus_pt)
        else:
            mod = one_minus_pt
            for _ in range(gi - 1):
                mod = mod * one_minus_pt
    else:
        mod = one_minus_pt ** g

    # alpha is folded into the final scale in the wrapper.
    focal = mod * bce

    if needs_mask:
        # Zero out alignment padding and the garbage region of the partial
        # edge block (all static except the grid step).
        step = pl.program_id(0)
        rows_full = -(-n // _LANES)
        tail = n - (rows_full - 1) * _LANES          # valid lanes in last row
        row_ids = jax.lax.broadcasted_iota(jnp.int32, (tile_r, _LANES), 0)
        g_row = step * tile_r + row_ids
        if tail == _LANES:
            valid = g_row < rows_full
        else:
            lane_ids = jax.lax.broadcasted_iota(jnp.int32, (tile_r, _LANES), 1)
            valid = (g_row < rows_full - 1) | (
                (g_row == rows_full - 1) & (lane_ids < tail))
        focal = jnp.where(valid, focal, 0.0)

    # Per-tile partial sum as an (8, 128) block: reshape keeps the native
    # (8, 128) tiling, so the reduce over axis 0 is pure VALU vreg adds.
    part_ref[...] = focal.reshape(tile_r // 8, 8, _LANES).sum(axis=0)


def focal_loss(inputs, targets, alpha=1.0, gamma=2.0, tile_rows=2048,
               binary_targets=False):
    """Focal loss forward. `inputs` are probabilities (post-sigmoid); any shape."""
    assert inputs.shape == targets.shape
    n = math.prod(inputs.shape)
    assert n > 0

    x = inputs.reshape(-1)
    t = targets.reshape(-1)

    rows = -(-n // _LANES)
    if n % _LANES:
        # TODO(synk): a rank-1 kernel view would avoid this whole-array copy for
        # sizes that are not a multiple of 128; the pad value is irrelevant
        # because the kernel masks everything past the true n.
        pad = rows * _LANES - n
        x = jnp.pad(x, (0, pad))
        t = jnp.pad(t, (0, pad))
    x = x.reshape(rows, _LANES)   # free bitcast when no pad was needed
    t = t.reshape(rows, _LANES)

    # Tile rows: multiple of 16 (bf16-safe sublanes), capped at `tile_rows`.
    cap = max(16, (int(tile_rows) // 16) * 16)
    tile_r = min(cap, ((rows + 15) // 16) * 16)
    n_tiles = -(-rows // tile_r)
    needs_mask = (n_tiles * tile_r * _LANES) != n

    kernel = functools.partial(
        _focal_loss_kernel, gamma=float(gamma), tile_r=tile_r, n=n,
        needs_mask=needs_mask, binary_targets=bool(binary_targets))

    cost = pl.CostEstimate(
        flops=(9 if binary_targets else 13) * n,
        transcendentals=(1 if binary_targets else 3) * n,
        bytes_accessed=n * (x.dtype.itemsize + t.dtype.itemsize)
                       + n_tiles * 8 * _LANES * 4)

    partials = pl.pallas_call(
        kernel,
        out_shape=jax.ShapeDtypeStruct((n_tiles * 8, _LANES), jnp.float32),
        grid=(n_tiles,),
        in_specs=[
            pl.BlockSpec((tile_r, _LANES), lambda i: (i, 0)),
            pl.BlockSpec((tile_r, _LANES), lambda i: (i, 0)),
        ],
        out_specs=pl.BlockSpec((8, _LANES), lambda i: (i, 0)),
        compiler_params=pltpu.CompilerParams(
            dimension_semantics=("parallel",)),
        cost_estimate=cost,
    )(x, t)

    # Tiny final reduce (n_tiles * 4 KiB) + mean / alpha scale in the wrapper.
    return jnp.sum(partials) * jnp.float32(float(alpha) / float(n))


def _reference(inputs, targets, alpha, gamma):
    """Pure-JAX reference with PyTorch FocalLoss semantics."""
    log_p = jnp.maximum(jnp.log(inputs), -100.0)
    log_1mp = jnp.maximum(jnp.log(1.0 - inputs), -100.0)
    bce = -(targets * log_p + (1.0 - targets) * log_1mp)
    pt = jnp.exp(-bce)
    return jnp.mean(alpha * (1.0 - pt) ** gamma * bce)


if __name__ == "__main__":
    key = jax.random.PRNGKey(0)
    k1, k2, k3, k4 = jax.random.split(key, 4)

    # Case 1: batch=4 x 50 sigmoid outputs (numel=200, not a multiple of 128
    # -> exercises the alignment pad + in-kernel tail mask), binary targets.
    b1, o1 = 4, 50
    p1 = jax.nn.sigmoid(jax.random.normal(k1, (b1, o1), dtype=jnp.float32))
    t1 = jax.random.bernoulli(k2, 0.5, (b1, o1)).astype(jnp.float32)
    loss1 = focal_loss(p1, t1, alpha=1.0, gamma=2.0)
    jax.block_until_ready(loss1)
    ref1 = _reference(p1, t1, 1.0, 2.0)
    assert jnp.allclose(loss1, ref1, rtol=1e-4, atol=1e-6), (loss1, ref1)

    # Case 2: 128-aligned numel (no host-side pad at all), soft targets,
    # different alpha.
    b2, o2 = 4, 64
    p2 = jax.nn.sigmoid(jax.random.normal(k3, (b2, o2), dtype=jnp.float32))
    t2 = jax.random.uniform(k4, (b2, o2), dtype=jnp.float32)
    loss2 = focal_loss(p2, t2, alpha=0.25, gamma=2.0)
    jax.block_until_ready(loss2)
    ref2 = _reference(p2, t2, 0.25, 2.0)
    assert jnp.allclose(loss2, ref2, rtol=1e-4, atol=1e-6), (loss2, ref2)

    # Case 3: binary-target fast path (1 transcendental/elem) on case 1 data.
    loss1b = focal_loss(p1, t1, alpha=1.0, gamma=2.0, binary_targets=True)
    jax.block_until_ready(loss1b)
    assert jnp.allclose(loss1b, ref1, rtol=1e-4, atol=1e-6), (loss1b, ref1)

    print("KERNEL_OK")
</pallas_src>

<mosaic_0001>
module attributes {stable_mosaic.version = 11 : i64} {
  func.func @_focal_loss_kernel(%arg0: i32, %arg1: memref<16x128xf32, #tpu.memory_space<vmem>>, %arg2: memref<16x128xf32, #tpu.memory_space<vmem>>, %arg3: memref<8x128xf32, #tpu.memory_space<vmem>>) attributes {dimension_semantics = [#tpu.dimension_semantics<parallel>], iteration_bounds = array<i64: 1>, scalar_prefetch = 0 : i64, scratch_operands = 0 : i64, tpu.core_type = #tpu.core_type<tc>, window_params = [{transform_indices = @transform_0, window_bounds = array<i64: 16, 128>}, {transform_indices = @transform_1, window_bounds = array<i64: 16, 128>}, {transform_indices = @transform_2, window_bounds = array<i64: 8, 128>}]} {
    %c0 = arith.constant 0 : index
    %c0_0 = arith.constant 0 : index
    %0 = vector.load %arg1[%c0, %c0_0] : memref<16x128xf32, #tpu.memory_space<vmem>>, vector<16x128xf32>
    %c0_1 = arith.constant 0 : index
    %c0_2 = arith.constant 0 : index
    %1 = vector.load %arg2[%c0_1, %c0_2] : memref<16x128xf32, #tpu.memory_space<vmem>>, vector<16x128xf32>
    %2 = math.log %0 : vector<16x128xf32>
    %cst = arith.constant -1.000000e+02 : f32
    %3 = vector.broadcast %cst : f32 to vector<16x128xf32>
    %4 = arith.maximumf %2, %3 : vector<16x128xf32>
    %cst_3 = arith.constant 1.000000e+00 : f32
    %5 = vector.broadcast %cst_3 : f32 to vector<16x128xf32>
    %6 = arith.subf %5, %0 : vector<16x128xf32>
    %7 = math.log %6 : vector<16x128xf32>
    %cst_4 = arith.constant -1.000000e+02 : f32
    %8 = vector.broadcast %cst_4 : f32 to vector<16x128xf32>
    %9 = arith.maximumf %7, %8 : vector<16x128xf32>
    %10 = arith.mulf %1, %4 : vector<16x128xf32>
    %cst_5 = arith.constant 1.000000e+00 : f32
    %11 = vector.broadcast %cst_5 : f32 to vector<16x128xf32>
    %12 = arith.subf %11, %1 : vector<16x128xf32>
    %13 = arith.mulf %12, %9 : vector<16x128xf32>
    %14 = arith.addf %10, %13 : vector<16x128xf32>
    %cst_6 = arith.constant 0.000000e+00 : f32
    %15 = vector.broadcast %cst_6 : f32 to vector<16x128xf32>
    %16 = arith.subf %15, %14 : vector<16x128xf32>
    %cst_7 = arith.constant 0.000000e+00 : f32
    %17 = vector.broadcast %cst_7 : f32 to vector<16x128xf32>
    %18 = arith.subf %17, %16 : vector<16x128xf32>
    %19 = math.exp %18 : vector<16x128xf32>
    %cst_8 = arith.constant 1.000000e+00 : f32
    %20 = vector.broadcast %cst_8 : f32 to vector<16x128xf32>
    %21 = arith.subf %20, %19 : vector<16x128xf32>
    %22 = arith.mulf %21, %21 : vector<16x128xf32>
    %23 = arith.mulf %22, %16 : vector<16x128xf32>
    %24 = tpu.iota {dimensions = array<i32: 0>} : vector<16x128xi32>
    %c16_i32 = arith.constant 16 : i32
    %25 = arith.muli %arg0, %c16_i32 : i32
    %26 = vector.broadcast %25 : i32 to vector<16x128xi32>
    %27 = arith.addi %26, %24 : vector<16x128xi32>
    %28 = tpu.iota {dimensions = array<i32: 1>} : vector<16x128xi32>
    %c1_i32 = arith.constant 1 : i32
    %29 = vector.broadcast %c1_i32 : i32 to vector<16x128xi32>
    %30 = arith.cmpi slt, %27, %29 : vector<16x128xi32>
    %c1_i32_9 = arith.constant 1 : i32
    %31 = vector.broadcast %c1_i32_9 : i32 to vector<16x128xi32>
    %32 = arith.cmpi eq, %27, %31 : vector<16x128xi32>
    %c72_i32 = arith.constant 72 : i32
    %33 = vector.broadcast %c72_i32 : i32 to vector<16x128xi32>
    %34 = arith.cmpi slt, %28, %33 : vector<16x128xi32>
    %35 = arith.andi %32, %34 : vector<16x128xi1>
    %36 = arith.ori %30, %35 : vector<16x128xi1>
    %cst_10 = arith.constant 0.000000e+00 : f32
    %37 = vector.broadcast %cst_10 : f32 to vector<16x128xf32>
    %38 = arith.select %36, %23, %37 : vector<16x128xi1>, vector<16x128xf32>
    %39 = vector.shape_cast %38 : vector<16x128xf32> to vector<2x8x128xf32>
    %cst_11 = arith.constant dense<0.000000e+00> : vector<8x128xf32>
    %40 = vector.multi_reduction <add>, %39, %cst_11 [0] : vector<2x8x128xf32> to vector<8x128xf32>
    %c0_12 = arith.constant 0 : index
    %c0_13 = arith.constant 0 : index
    %41 = vector.load %arg3[%c0_12, %c0_13] : memref<8x128xf32, #tpu.memory_space<vmem>>, vector<8x128xf32>
    tpu.vector_store %arg3[%c0_12, %c0_13], %40 {strides = array<i32>} : memref<8x128xf32, #tpu.memory_space<vmem>>, vector<8x128xf32>,
    return
  }
  func.func @transform_0(%arg0: i32) -> (i32, i32) {
    %c0_i32 = arith.constant 0 : i32
    %c0_i32_0 = arith.constant 0 : i32
    return %arg0, %c0_i32 : i32, i32
  }
  func.func @transform_1(%arg0: i32) -> (i32, i32) {
    %c0_i32 = arith.constant 0 : i32
    %c0_i32_0 = arith.constant 0 : i32
    return %arg0, %c0_i32 : i32, i32
  }
  func.func @transform_2(%arg0: i32) -> (i32, i32) {
    %c0_i32 = arith.constant 0 : i32
    %c0_i32_0 = arith.constant 0 : i32
    return %arg0, %c0_i32 : i32, i32
  }
}

</mosaic_0001>

<bundles_post_ra>
// kernel: tpu_custom_call.1
= control target key start
LH: loop header
LB: loop body
LE: loop exit
PB: predicated region body
PF: predicated region fallthrough
CT: control target
= control target key end

     0   :  { %7 = vsyncpa [#allocation3], 0  ;;  %s242_s0 = inlined_call_operand.hbm [shape: f32[2,128], index: 0, kind: input, shape index: {}]   ;;  %s243_s1 = inlined_call_operand.hbm [shape: f32[2,128], index: 1, kind: input, shape index: {}]   ;;  %s244_s2 = inlined_call_operand.hbm [shape: f32[8,128], index: 2, kind: output, shape index: {}]  }
   0x1   :  { %8 = vsyncpa [#allocation6], 0 }
   0x2   :  { %9 = vsyncpa [#allocation4], 0 }
   0x3   :  { %13 = vsyncadd [#allocation3], 224  ;;  %s14_s11 = sshll.u32 %s242_s0, 4  ;;  %s213_s12 = smov [#allocation2]   ;;  %s15_s11 = int_to_ptr.hbm [resolvable:$true] %s14_s11 }
   0x4   :  { %s16_s13 = sshll.u32 %s213_s12, 4  ;;  %s214_s14 = smov 32   ;;  %s17_s13 = int_to_ptr.vmem [resolvable:$true] %s16_s13 }
   0x5   :  { %s215_s15 = smov 2  }
   0x6   :  { %22 = dma.hbm_to_vmem [thread:$0]  %s15_s11, 32, %s17_s13, [#allocation3], %s214_s14, %s214_s14, %s215_s15  }
   0x7   :  { %26 = vsyncadd [#allocation6], 224  ;;  %s27_s18 = sshll.u32 %s243_s1, 4  ;;  %s216_s19 = smov [#allocation5]   ;;  %s28_s18 = int_to_ptr.hbm [resolvable:$true] %s27_s18 }
   0x8   :  { %s29_s20 = sshll.u32 %s216_s19, 4  ;;  %s30_s20 = int_to_ptr.vmem [resolvable:$true] %s29_s20 }
   0x9   :  { %35 = dma.hbm_to_vmem [thread:$0]  %s28_s18, 32, %s30_s20, [#allocation6], %s214_s14, %s214_s14, %s215_s15  }
   0xa   :  { %207 = dma.done.wait [#allocation3], 256  }
   0xb   :  { %208 = vsyncadd [#allocation3], 4294967040 }
   0xc   :  { %209 = dma.done.wait [#allocation6], 256  }
   0xd   :  { %210 = vsyncadd [#allocation6], 4294967040  ;;  %v44_v0 = vld [vmem:[#allocation2] sm:$0xff]  ;;  %v46_v3 = vld [vmem:[#allocation5] sm:$0xff]  ;;  %v84_v15 = vlaneseq  ;;  %s217_s0 = smov [#allocation7]   ;;  %s113_s23 = sshll.u32 %s244_s2, 4  ;;  %s114_s23 = int_to_ptr.hbm [resolvable:$true] %s113_s23 }
   0xe   :  { %129 = vlog2.f32 %v44_v0  ;;  %v54_v1 = vsub.f32 1.0, %v44_v0  ;;  %v64_v8 = vsub.f32 1.0, %v46_v3  ;;  %s111_s1 = sshll.u32 %s217_s0, 4  ;;  %s112_s1 = int_to_ptr.vmem [resolvable:$true] %s111_s1 }
   0xf   :  { %v85_v17 = vshrl.u32 %v84_v15, 7  ;;  %v92_v18 = vand.u32 127, %v84_v15 }
  0x10   :  { %131 = vlog2.f32 %v54_v1 }
  0x11   :  { %vm95_vm0 = vcmp.eq.s32.totalorder %v85_v17, 1  ;;  %vm97_vm1 = vcmp.lt.s32.totalorder %v92_v18, 72  ;;  %vm93_vm2 = vcmp.lt.s32.totalorder %v85_v17, 1 }
  0x12   :  { %vm98_vm3 = vmand %vm95_vm0, %vm97_vm1 }
  0x13   :  { %vm100_vm4 = vmor %vm93_vm2, %vm98_vm3 }
  0x14   :  { %v130_v2 = vpop.eup %129 }
  0x15   :  { %v49_v4 = vmul.f32 0.6931472, %v130_v2 }
  0x16   :  { %v132_v5 = vpop.eup %131 }
  0x17   :  { %v52_v6 = vmax.f32 %v49_v4, -100.0  ;;  %v57_v7 = vmul.f32 0.6931472, %v132_v5 }
  0x19   :  { %v60_v9 = vmax.f32 %v57_v7, -100.0  ;;  %v62_v10 = vmul.f32 %v52_v6, %v46_v3 }
  0x1b   :  { %v66_v11 = vmul.f32 %v64_v8, %v60_v9 }
  0x1d   :  { %v68_v12 = vadd.f32 %v66_v11, %v62_v10 }
  0x1f   :  { %v70_v13 = vsub.f32 0.0, %v68_v12 }
  0x21   :  { %v72_v14 = vsub.f32 0.0, %v70_v13 }
  0x23   :  { %v74_v16 = vmul.f32 1.442695, %v72_v14 }
  0x25   :  { %133 = vpow2.f32 %v74_v16 }
  0x2b   :  { %v134_v19 = vpop.eup %133 }
  0x2c   :  { %v78_v20 = vsub.f32 1.0, %v134_v19 }
  0x2e   :  { %v80_v21 = vmul.f32 %v78_v20, %v78_v20 }
  0x30   :  { %v82_v22 = vmul.f32 %v80_v21, %v70_v13 }
  0x32   :  { %v102_v23 = vsel %vm100_vm4, %v82_v22, 0.0 }
  0x33   :  { %105 = vst [vmem:[#allocation7] sm:$0xff] %v102_v23 }
  0x34   :  { %116 = dma.vmem_to_hbm [thread:$0]  %s112_s1, 128, %s114_s23, [#allocation4]  }
  0x35   :  { %211 = dma.done.wait [#allocation4], 128  }
  0x36   :  { %212 = vsyncadd [#allocation4], 4294967168 }
  0x37   :  { %121 = vsyncpa [#allocation3], 1 }
  0x38   :  { %122 = vsyncpa [#allocation6], 1 }
  0x39   :  { %123 = vsyncpa [#allocation4], 1 }

</bundles_post_ra>
